<compile_context>
chip_gen: v6e
topology: v6e:2x2x1
jax: 0.10.0
libtpu: 0.0.40
codegen_flags: <defaults>
</compile_context>

<pallas_src>
import functools

import jax
import jax.numpy as jnp
from jax.experimental import pallas as pl
from jax.experimental.pallas import tpu as pltpu


# ---------------------------------------------------------------------------
# layout helpers
# ---------------------------------------------------------------------------

def _choose_layout(n, max_block_elems=262144):
    """Map N flat pixels to a lane-dense (rows, cols) slab + block height.

    cols is a multiple of 128 (lane dim), preferring wide slabs with >= 8 rows
    (sublane-full vregs).  Block height `tm` is capped so a single fp32 block
    stays ~<= 1 MiB (safe for v7x's 64 MiB VMEM / default scoped limits while
    still amortizing the ~0.35 us per-grid-step overhead).
    """
    cols = None
    for c in (2048, 1024, 512, 256, 128):
        if n % c == 0 and (n // c) >= 8:
            cols = c
            break
    if cols is None:
        for c in (2048, 1024, 512, 256, 128):
            if n % c == 0:
                cols = c
                break
    if cols is None:
        raise ValueError("B*H*W must be a multiple of 128")
    rows = n // cols
    tm = rows  # fallback: full height (always legal)
    for cand in (512, 256, 128, 64, 32, 16, 8):
        if rows % cand == 0 and cand * cols <= max_block_elems:
            tm = cand
            break
    return rows, cols, tm


def _pack_params(params):
    """Flatten all conv weights/biases + BN gamma/beta into one SMEM vector.

    layout (R = bottleneck):
      [0, 2R)        w1 (R,2) row-major        [2R, 3R)   b1 (R,)
      [3R, 5R)       w2 (2,R) row-major        [5R, 5R+2) b2 (2,)
      [5R+2, 5R+4)   w3 (1,2)                  [5R+4]     b3
      [5R+5]         gamma                     [5R+6]     beta
    """
    w1, b1, w2, b2, w3, b3, gamma, beta = params
    return jnp.concatenate([
        w1.reshape(-1), b1.reshape(-1),
        w2.reshape(-1), b2.reshape(-1),
        w3.reshape(-1), b3.reshape(-1),
        gamma.reshape(-1), beta.reshape(-1),
    ]).astype(jnp.float32)


# ---------------------------------------------------------------------------
# kernels
# ---------------------------------------------------------------------------

def _gate_fuse(p, x1, x2, R):
    """Gating MLP + gate multiply + final 1x1 conv, all as broadcast VPU FMAs.

    p is a 1D SMEM ref of packed scalars (see _pack_params); x1/x2 are fp32
    tiles.  Contraction dims are 2 and R, so the MXU would waste >97% of the
    systolic array — scalar*tile FMAs on the VPU are the right tool.
    """
    acc0 = jnp.zeros_like(x1)
    acc1 = jnp.zeros_like(x1)
    for r in range(R):  # R is small (bottleneck), static unroll
        h = jnp.maximum(p[2 * r] * x1 + p[2 * r + 1] * x2 + p[2 * R + r], 0.0)
        acc0 = acc0 + p[3 * R + r] * h
        acc1 = acc1 + p[4 * R + r] * h
    g0 = jax.nn.sigmoid(acc0 + p[5 * R + 0])
    g1 = jax.nn.sigmoid(acc1 + p[5 * R + 1])
    return p[5 * R + 2] * (x1 * g0) + p[5 * R + 3] * (x2 * g1) + p[5 * R + 4]


def _fused_small_kernel(p_ref, x1_ref, x2_ref, o_ref, *, R, n):
    """Fully fused path (single block): gate + conv + exact training-mode BN."""
    x1 = x1_ref[...].astype(jnp.float32)
    x2 = x2_ref[...].astype(jnp.float32)
    y = _gate_fuse(p_ref, x1, x2, R)
    mean = jnp.sum(y) / n
    d = y - mean
    var = jnp.sum(d * d) / n          # centered -> numerically stable
    inv_std = jax.lax.rsqrt(var + 1e-5)
    gamma = p_ref[5 * R + 5]
    beta = p_ref[5 * R + 6]
    o_ref[...] = d * (inv_std * gamma) + beta


def _fuse_tile_kernel(p_ref, x1_ref, x2_ref, y_ref, psum_ref, psq_ref, *, R):
    """Tiled pass 1: pre-BN output + per-tile BN partial sums (grid-parallel safe)."""
    x1 = x1_ref[...].astype(jnp.float32)
    x2 = x2_ref[...].astype(jnp.float32)
    y = _gate_fuse(p_ref, x1, x2, R)
    y_ref[...] = y
    psum_ref[...] = jnp.sum(y, axis=0, keepdims=True)
    psq_ref[...] = jnp.sum(y * y, axis=0, keepdims=True)


def _bn_apply_kernel(s_ref, y_ref, o_ref):
    """Tiled pass 2: BN as one FMA; s = [gamma*inv_std, beta - mean*gamma*inv_std]."""
    o_ref[...] = y_ref[...] * s_ref[0] + s_ref[1]


# ---------------------------------------------------------------------------
# wrapper
# ---------------------------------------------------------------------------

def ssma_forward(x1, x2, params, *, force_two_pass=False,
                 max_block_elems=262144, fused_elem_limit=262144):
    w1 = params[0]
    gamma, beta = params[6], params[7]
    R = w1.shape[0]
    B, H, W = x1.shape
    N = B * H * W
    rows, cols, tm = _choose_layout(N, max_block_elems)
    n_tiles = rows // tm

    p = _pack_params(params)
    # glue: pure reshapes (no copy) — x1/x2 stay separate, no stacked layout
    X1 = x1.reshape(rows, cols)
    X2 = x2.reshape(rows, cols)

    smem_spec = pl.BlockSpec(memory_space=pltpu.MemorySpace.SMEM)

    if (not force_two_pass) and N <= fused_elem_limit:
        # --- fused single-kernel path: y stays in VMEM, BN applied in place ---
        out2d = pl.pallas_call(
            functools.partial(_fused_small_kernel, R=R, n=float(N)),
            out_shape=jax.ShapeDtypeStruct((rows, cols), jnp.float32),
            grid=(1,),
            in_specs=[
                smem_spec,
                pl.BlockSpec((rows, cols), lambda i: (0, 0)),
                pl.BlockSpec((rows, cols), lambda i: (0, 0)),
            ],
            out_specs=pl.BlockSpec((rows, cols), lambda i: (0, 0)),
        )(p, X1, X2)
        return jnp.squeeze(out2d.reshape(B, 1, H, W))

    # --- tiled two-pass path (large N) ---
    y, psum, psq = pl.pallas_call(
        functools.partial(_fuse_tile_kernel, R=R),
        out_shape=(
            jax.ShapeDtypeStruct((rows, cols), jnp.float32),
            jax.ShapeDtypeStruct((n_tiles, cols), jnp.float32),
            jax.ShapeDtypeStruct((n_tiles, cols), jnp.float32),
        ),
        grid=(n_tiles,),
        in_specs=[
            smem_spec,
            pl.BlockSpec((tm, cols), lambda i: (i, 0)),
            pl.BlockSpec((tm, cols), lambda i: (i, 0)),
        ],
        out_specs=(
            pl.BlockSpec((tm, cols), lambda i: (i, 0)),
            pl.BlockSpec((1, cols), lambda i: (i, 0)),
            pl.BlockSpec((1, cols), lambda i: (i, 0)),
        ),
        compiler_params=pltpu.CompilerParams(
            dimension_semantics=("parallel",)),
    )(p, X1, X2)

    # glue: finalize training-mode BN statistics (tiny fp32 reduction)
    # TODO(synk): E[y^2]-E[y]^2 can cancel for extreme N/|mean|; an exact
    # centered pass would cost one extra full read of y.
    total = jnp.sum(psum)
    total_sq = jnp.sum(psq)
    mean = total / N
    var = total_sq / N - mean * mean
    a = jax.lax.rsqrt(var + 1e-5) * gamma[0]
    b = beta[0] - mean * a
    scal = jnp.stack([a, b]).astype(jnp.float32)

    out2d = pl.pallas_call(
        _bn_apply_kernel,
        out_shape=jax.ShapeDtypeStruct((rows, cols), jnp.float32),
        grid=(n_tiles,),
        in_specs=[
            smem_spec,
            pl.BlockSpec((tm, cols), lambda i: (i, 0)),
        ],
        out_specs=pl.BlockSpec((tm, cols), lambda i: (i, 0)),
        input_output_aliases={1: 0},   # overwrite y in place
        compiler_params=pltpu.CompilerParams(
            dimension_semantics=("parallel",)),
    )(scal, y)

    return jnp.squeeze(out2d.reshape(B, 1, H, W))


# ---------------------------------------------------------------------------
# params / reference
# ---------------------------------------------------------------------------

def init_params(key, features=1, bottleneck=4):
    """Deterministic parameter init mirroring the PyTorch module's __init__."""
    dfeat = 2 * features
    R = bottleneck
    ks = jax.random.split(key, 6)

    def kaiming_uniform(k, shape, fan_in):
        # nn.init.kaiming_uniform_(nonlinearity='relu'): bound = sqrt(2)*sqrt(3/fan_in)
        bound = (6.0 / fan_in) ** 0.5
        return jax.random.uniform(k, shape, jnp.float32, -bound, bound)

    def bias_uniform(k, shape, fan_in):
        bound = 1.0 / (fan_in ** 0.5)
        return jax.random.uniform(k, shape, jnp.float32, -bound, bound)

    w1 = kaiming_uniform(ks[0], (R, dfeat), dfeat)          # link[0].weight (R,2,1,1)
    b1 = bias_uniform(ks[1], (R, 1), dfeat)                 # link[0].bias
    w2 = kaiming_uniform(ks[2], (dfeat, R), R)              # link[2].weight (2,R,1,1)
    b2 = bias_uniform(ks[3], (dfeat, 1), R)                 # link[2].bias
    w3 = kaiming_uniform(ks[4], (features, dfeat), dfeat)   # final_conv[0].weight
    b3 = bias_uniform(ks[5], (features, 1), dfeat)          # final_conv[0].bias
    gamma = jnp.ones((features,), jnp.float32)              # BatchNorm2d.weight
    beta = jnp.zeros((features,), jnp.float32)              # BatchNorm2d.bias
    return (w1, b1, w2, b2, w3, b3, gamma, beta)


def ssma_reference(x1, x2, params):
    """Pure-JAX reference of the exact PyTorch forward (training-mode BN)."""
    w1, b1, w2, b2, w3, b3, gamma, beta = params
    B, H, W = x1.shape
    X = jnp.stack([x1.reshape(-1), x2.reshape(-1)], axis=0).astype(jnp.float32)
    h = jnp.maximum(w1 @ X + b1, 0.0)
    g = jax.nn.sigmoid(w2 @ h + b2)
    y = w3 @ (X * g) + b3
    mean = jnp.mean(y)
    var = jnp.mean((y - mean) ** 2)
    yn = (y - mean) * jax.lax.rsqrt(var + 1e-5) * gamma[0] + beta[0]
    return jnp.squeeze(yn.reshape(B, 1, H, W))


if __name__ == "__main__":
    key = jax.random.PRNGKey(0)
    kx1, kx2, kp = jax.random.split(key, 3)

    # features = 1 (forced by the forward's unsqueeze/cat), bottleneck = 4
    B, H, W = 2, 32, 64   # N = 4096 -> (rows, cols) = (8, 512): sublane-full, lane-dense
    x1 = jax.random.normal(kx1, (B, H, W), jnp.float32)
    x2 = jax.random.normal(kx2, (B, H, W), jnp.float32)
    params = init_params(kp, features=1, bottleneck=4)

    ref = ssma_reference(x1, x2, params)

    # fused single-kernel path (what small/medium inputs take)
    out_fused = jax.block_until_ready(ssma_forward(x1, x2, params))
    assert out_fused.shape == (B, H, W)
    assert jnp.allclose(out_fused, ref, atol=1e-4, rtol=1e-4)

    # tiled two-pass path (what large inputs take) — exercised for correctness
    out_tiled = jax.block_until_ready(
        ssma_forward(x1, x2, params, force_two_pass=True))
    assert out_tiled.shape == (B, H, W)
    assert jnp.allclose(out_tiled, ref, atol=1e-4, rtol=1e-4)

    print("KERNEL_OK")
</pallas_src>

<mosaic_0001>
module attributes {stable_mosaic.version = 11 : i64} {
  func.func @_fused_small_kernel(%arg0: i32, %arg1: memref<27xf32, #tpu.memory_space<smem>>, %arg2: memref<8x512xf32, #tpu.memory_space<vmem>>, %arg3: memref<8x512xf32, #tpu.memory_space<vmem>>, %arg4: memref<8x512xf32, #tpu.memory_space<vmem>>) attributes {dimension_semantics = [#tpu.dimension_semantics<arbitrary>], iteration_bounds = array<i64: 1>, scalar_prefetch = 0 : i64, scratch_operands = 0 : i64, tpu.core_type = #tpu.core_type<tc>, window_params = [{transform_indices = @transform_0, window_bounds = array<i64: 27>}, {pipeline_mode = #tpu.pipeline_mode<synchronous>, transform_indices = @transform_1, window_bounds = array<i64: 8, 512>}, {pipeline_mode = #tpu.pipeline_mode<synchronous>, transform_indices = @transform_2, window_bounds = array<i64: 8, 512>}, {pipeline_mode = #tpu.pipeline_mode<synchronous>, transform_indices = @transform_3, window_bounds = array<i64: 8, 512>}]} {
    %c0 = arith.constant 0 : index
    %c0_0 = arith.constant 0 : index
    %0 = vector.load %arg2[%c0, %c0_0] : memref<8x512xf32, #tpu.memory_space<vmem>>, vector<8x512xf32>
    %c0_1 = arith.constant 0 : index
    %c0_2 = arith.constant 0 : index
    %1 = vector.load %arg3[%c0_1, %c0_2] : memref<8x512xf32, #tpu.memory_space<vmem>>, vector<8x512xf32>
    %cst = arith.constant 0.000000e+00 : f32
    %2 = vector.broadcast %cst : f32 to vector<8x512xf32>
    %cst_3 = arith.constant 0.000000e+00 : f32
    %3 = vector.broadcast %cst_3 : f32 to vector<8x512xf32>
    %c0_4 = arith.constant 0 : index
    %4 = memref.load %arg1[%c0_4] : memref<27xf32, #tpu.memory_space<smem>>
    %5 = vector.broadcast %4 : f32 to vector<8x512xf32>
    %6 = arith.mulf %5, %0 : vector<8x512xf32>
    %c1 = arith.constant 1 : index
    %7 = memref.load %arg1[%c1] : memref<27xf32, #tpu.memory_space<smem>>
    %8 = vector.broadcast %7 : f32 to vector<8x512xf32>
    %9 = arith.mulf %8, %1 : vector<8x512xf32>
    %10 = arith.addf %6, %9 : vector<8x512xf32>
    %c8 = arith.constant 8 : index
    %11 = memref.load %arg1[%c8] : memref<27xf32, #tpu.memory_space<smem>>
    %12 = vector.broadcast %11 : f32 to vector<8x512xf32>
    %13 = arith.addf %10, %12 : vector<8x512xf32>
    %cst_5 = arith.constant 0.000000e+00 : f32
    %14 = vector.broadcast %cst_5 : f32 to vector<8x512xf32>
    %15 = arith.maximumf %13, %14 : vector<8x512xf32>
    %c12 = arith.constant 12 : index
    %16 = memref.load %arg1[%c12] : memref<27xf32, #tpu.memory_space<smem>>
    %17 = vector.broadcast %16 : f32 to vector<8x512xf32>
    %18 = arith.mulf %17, %15 : vector<8x512xf32>
    %19 = arith.addf %2, %18 : vector<8x512xf32>
    %c16 = arith.constant 16 : index
    %20 = memref.load %arg1[%c16] : memref<27xf32, #tpu.memory_space<smem>>
    %21 = vector.broadcast %20 : f32 to vector<8x512xf32>
    %22 = arith.mulf %21, %15 : vector<8x512xf32>
    %23 = arith.addf %3, %22 : vector<8x512xf32>
    %c2 = arith.constant 2 : index
    %24 = memref.load %arg1[%c2] : memref<27xf32, #tpu.memory_space<smem>>
    %25 = vector.broadcast %24 : f32 to vector<8x512xf32>
    %26 = arith.mulf %25, %0 : vector<8x512xf32>
    %c3 = arith.constant 3 : index
    %27 = memref.load %arg1[%c3] : memref<27xf32, #tpu.memory_space<smem>>
    %28 = vector.broadcast %27 : f32 to vector<8x512xf32>
    %29 = arith.mulf %28, %1 : vector<8x512xf32>
    %30 = arith.addf %26, %29 : vector<8x512xf32>
    %c9 = arith.constant 9 : index
    %31 = memref.load %arg1[%c9] : memref<27xf32, #tpu.memory_space<smem>>
    %32 = vector.broadcast %31 : f32 to vector<8x512xf32>
    %33 = arith.addf %30, %32 : vector<8x512xf32>
    %cst_6 = arith.constant 0.000000e+00 : f32
    %34 = vector.broadcast %cst_6 : f32 to vector<8x512xf32>
    %35 = arith.maximumf %33, %34 : vector<8x512xf32>
    %c13 = arith.constant 13 : index
    %36 = memref.load %arg1[%c13] : memref<27xf32, #tpu.memory_space<smem>>
    %37 = vector.broadcast %36 : f32 to vector<8x512xf32>
    %38 = arith.mulf %37, %35 : vector<8x512xf32>
    %39 = arith.addf %19, %38 : vector<8x512xf32>
    %c17 = arith.constant 17 : index
    %40 = memref.load %arg1[%c17] : memref<27xf32, #tpu.memory_space<smem>>
    %41 = vector.broadcast %40 : f32 to vector<8x512xf32>
    %42 = arith.mulf %41, %35 : vector<8x512xf32>
    %43 = arith.addf %23, %42 : vector<8x512xf32>
    %c4 = arith.constant 4 : index
    %44 = memref.load %arg1[%c4] : memref<27xf32, #tpu.memory_space<smem>>
    %45 = vector.broadcast %44 : f32 to vector<8x512xf32>
    %46 = arith.mulf %45, %0 : vector<8x512xf32>
    %c5 = arith.constant 5 : index
    %47 = memref.load %arg1[%c5] : memref<27xf32, #tpu.memory_space<smem>>
    %48 = vector.broadcast %47 : f32 to vector<8x512xf32>
    %49 = arith.mulf %48, %1 : vector<8x512xf32>
    %50 = arith.addf %46, %49 : vector<8x512xf32>
    %c10 = arith.constant 10 : index
    %51 = memref.load %arg1[%c10] : memref<27xf32, #tpu.memory_space<smem>>
    %52 = vector.broadcast %51 : f32 to vector<8x512xf32>
    %53 = arith.addf %50, %52 : vector<8x512xf32>
    %cst_7 = arith.constant 0.000000e+00 : f32
    %54 = vector.broadcast %cst_7 : f32 to vector<8x512xf32>
    %55 = arith.maximumf %53, %54 : vector<8x512xf32>
    %c14 = arith.constant 14 : index
    %56 = memref.load %arg1[%c14] : memref<27xf32, #tpu.memory_space<smem>>
    %57 = vector.broadcast %56 : f32 to vector<8x512xf32>
    %58 = arith.mulf %57, %55 : vector<8x512xf32>
    %59 = arith.addf %39, %58 : vector<8x512xf32>
    %c18 = arith.constant 18 : index
    %60 = memref.load %arg1[%c18] : memref<27xf32, #tpu.memory_space<smem>>
    %61 = vector.broadcast %60 : f32 to vector<8x512xf32>
    %62 = arith.mulf %61, %55 : vector<8x512xf32>
    %63 = arith.addf %43, %62 : vector<8x512xf32>
    %c6 = arith.constant 6 : index
    %64 = memref.load %arg1[%c6] : memref<27xf32, #tpu.memory_space<smem>>
    %65 = vector.broadcast %64 : f32 to vector<8x512xf32>
    %66 = arith.mulf %65, %0 : vector<8x512xf32>
    %c7 = arith.constant 7 : index
    %67 = memref.load %arg1[%c7] : memref<27xf32, #tpu.memory_space<smem>>
    %68 = vector.broadcast %67 : f32 to vector<8x512xf32>
    %69 = arith.mulf %68, %1 : vector<8x512xf32>
    %70 = arith.addf %66, %69 : vector<8x512xf32>
    %c11 = arith.constant 11 : index
    %71 = memref.load %arg1[%c11] : memref<27xf32, #tpu.memory_space<smem>>
    %72 = vector.broadcast %71 : f32 to vector<8x512xf32>
    %73 = arith.addf %70, %72 : vector<8x512xf32>
    %cst_8 = arith.constant 0.000000e+00 : f32
    %74 = vector.broadcast %cst_8 : f32 to vector<8x512xf32>
    %75 = arith.maximumf %73, %74 : vector<8x512xf32>
    %c15 = arith.constant 15 : index
    %76 = memref.load %arg1[%c15] : memref<27xf32, #tpu.memory_space<smem>>
    %77 = vector.broadcast %76 : f32 to vector<8x512xf32>
    %78 = arith.mulf %77, %75 : vector<8x512xf32>
    %79 = arith.addf %59, %78 : vector<8x512xf32>
    %c19 = arith.constant 19 : index
    %80 = memref.load %arg1[%c19] : memref<27xf32, #tpu.memory_space<smem>>
    %81 = vector.broadcast %80 : f32 to vector<8x512xf32>
    %82 = arith.mulf %81, %75 : vector<8x512xf32>
    %83 = arith.addf %63, %82 : vector<8x512xf32>
    %c20 = arith.constant 20 : index
    %84 = memref.load %arg1[%c20] : memref<27xf32, #tpu.memory_space<smem>>
    %85 = vector.broadcast %84 : f32 to vector<8x512xf32>
    %86 = arith.addf %79, %85 : vector<8x512xf32>
    %87 = arith.negf %86 : vector<8x512xf32>
    %88 = math.exp %87 : vector<8x512xf32>
    %cst_9 = arith.constant 1.000000e+00 : f32
    %89 = vector.broadcast %cst_9 : f32 to vector<8x512xf32>
    %90 = arith.addf %89, %88 : vector<8x512xf32>
    %91 = arith.divf %89, %90 : vector<8x512xf32>
    %c21 = arith.constant 21 : index
    %92 = memref.load %arg1[%c21] : memref<27xf32, #tpu.memory_space<smem>>
    %93 = vector.broadcast %92 : f32 to vector<8x512xf32>
    %94 = arith.addf %83, %93 : vector<8x512xf32>
    %95 = arith.negf %94 : vector<8x512xf32>
    %96 = math.exp %95 : vector<8x512xf32>
    %cst_10 = arith.constant 1.000000e+00 : f32
    %97 = vector.broadcast %cst_10 : f32 to vector<8x512xf32>
    %98 = arith.addf %97, %96 : vector<8x512xf32>
    %99 = arith.divf %97, %98 : vector<8x512xf32>
    %c22 = arith.constant 22 : index
    %100 = memref.load %arg1[%c22] : memref<27xf32, #tpu.memory_space<smem>>
    %101 = arith.mulf %0, %91 : vector<8x512xf32>
    %102 = vector.broadcast %100 : f32 to vector<8x512xf32>
    %103 = arith.mulf %102, %101 : vector<8x512xf32>
    %c23 = arith.constant 23 : index
    %104 = memref.load %arg1[%c23] : memref<27xf32, #tpu.memory_space<smem>>
    %105 = arith.mulf %1, %99 : vector<8x512xf32>
    %106 = vector.broadcast %104 : f32 to vector<8x512xf32>
    %107 = arith.mulf %106, %105 : vector<8x512xf32>
    %108 = arith.addf %103, %107 : vector<8x512xf32>
    %c24 = arith.constant 24 : index
    %109 = memref.load %arg1[%c24] : memref<27xf32, #tpu.memory_space<smem>>
    %110 = vector.broadcast %109 : f32 to vector<8x512xf32>
    %111 = arith.addf %108, %110 : vector<8x512xf32>
    %112 = vector.shape_cast %111 : vector<8x512xf32> to vector<1x8x512xf32>
    %cst_11 = arith.constant dense<0.000000e+00> : vector<1xf32>
    %113 = vector.multi_reduction <add>, %112, %cst_11 [1, 2] : vector<1x8x512xf32> to vector<1xf32>
    %114 = vector.shape_cast %113 : vector<1xf32> to vector<1x1x1xf32>
    %115 = vector.extract %114[0, 0, 0] : f32 from vector<1x1x1xf32>
    %cst_12 = arith.constant 4.096000e+03 : f32
    %116 = arith.divf %115, %cst_12 : f32
    %117 = vector.broadcast %116 : f32 to vector<8x512xf32>
    %118 = arith.subf %111, %117 : vector<8x512xf32>
    %119 = arith.mulf %118, %118 : vector<8x512xf32>
    %120 = vector.shape_cast %119 : vector<8x512xf32> to vector<1x8x512xf32>
    %cst_13 = arith.constant dense<0.000000e+00> : vector<1xf32>
    %121 = vector.multi_reduction <add>, %120, %cst_13 [1, 2] : vector<1x8x512xf32> to vector<1xf32>
    %122 = vector.shape_cast %121 : vector<1xf32> to vector<1x1x1xf32>
    %123 = vector.extract %122[0, 0, 0] : f32 from vector<1x1x1xf32>
    %cst_14 = arith.constant 4.096000e+03 : f32
    %124 = arith.divf %123, %cst_14 : f32
    %cst_15 = arith.constant 9.99999974E-6 : f32
    %125 = arith.addf %124, %cst_15 : f32
    %126 = math.rsqrt %125 : f32
    %c25 = arith.constant 25 : index
    %127 = memref.load %arg1[%c25] : memref<27xf32, #tpu.memory_space<smem>>
    %c26 = arith.constant 26 : index
    %128 = memref.load %arg1[%c26] : memref<27xf32, #tpu.memory_space<smem>>
    %129 = arith.mulf %126, %127 : f32
    %130 = vector.broadcast %129 : f32 to vector<8x512xf32>
    %131 = arith.mulf %118, %130 : vector<8x512xf32>
    %132 = vector.broadcast %128 : f32 to vector<8x512xf32>
    %133 = arith.addf %131, %132 : vector<8x512xf32>
    %c0_16 = arith.constant 0 : index
    %c0_17 = arith.constant 0 : index
    %134 = vector.load %arg4[%c0_16, %c0_17] : memref<8x512xf32, #tpu.memory_space<vmem>>, vector<8x512xf32>
    tpu.vector_store %arg4[%c0_16, %c0_17], %133 {strides = array<i32>} : memref<8x512xf32, #tpu.memory_space<vmem>>, vector<8x512xf32>,
    return
  }
  func.func @transform_0(%arg0: i32) -> i32 {
    %c0_i32 = arith.constant 0 : i32
    %c0_i32_0 = arith.constant 0 : i32
    return %c0_i32 : i32
  }
  func.func @transform_1(%arg0: i32) -> (i32, i32) {
    %c0_i32 = arith.constant 0 : i32
    %c0_i32_0 = arith.constant 0 : i32
    %c0_i32_1 = arith.constant 0 : i32
    return %c0_i32, %c0_i32_0 : i32, i32
  }
  func.func @transform_2(%arg0: i32) -> (i32, i32) {
    %c0_i32 = arith.constant 0 : i32
    %c0_i32_0 = arith.constant 0 : i32
    %c0_i32_1 = arith.constant 0 : i32
    return %c0_i32, %c0_i32_0 : i32, i32
  }
  func.func @transform_3(%arg0: i32) -> (i32, i32) {
    %c0_i32 = arith.constant 0 : i32
    %c0_i32_0 = arith.constant 0 : i32
    %c0_i32_1 = arith.constant 0 : i32
    return %c0_i32, %c0_i32_0 : i32, i32
  }
}

</mosaic_0001>

<bundles_post_ra>
// kernel: tpu_custom_call.1
= control target key start
LH: loop header
LB: loop body
LE: loop exit
PB: predicated region body
PF: predicated region fallthrough
CT: control target
= control target key end

     0   :  { %8 = vsyncpa [#allocation5], 0  ;;  %s706_s0 = inlined_call_operand.hbm [shape: f32[27], index: 0, kind: input, shape index: {}]   ;;  %s707_s1 = inlined_call_operand.hbm [shape: f32[8,512], index: 1, kind: input, shape index: {}]   ;;  %s708_s2 = inlined_call_operand.hbm [shape: f32[8,512], index: 2, kind: input, shape index: {}]   ;;  %s709_s3 = inlined_call_operand.hbm [shape: f32[8,512], index: 3, kind: output, shape index: {}]  }
   0x1   :  { %9 = vsyncpa [#allocation3], 0 }
   0x2   :  { %10 = vsyncpa [#allocation8], 0 }
   0x3   :  { %11 = vsyncpa [#allocation4], 0  ;;  %s563_s12 = smov [#allocation2]   ;;  %s564_s15 = smov [#allocation6]  }
   0x4   :  { %19 = dma.hbm_to_smem %s706_s0, 16, %s563_s12, [#allocation5]  }
   0x5   :  { %s26_s16 = sshll.u32 %s564_s15, 4  ;;  %s565_s17 = smov [#allocation7]   ;;  %s27_s16 = int_to_ptr.vmem [resolvable:$true] %s26_s16 }
   0x6   :  { %s36_s18 = sshll.u32 %s565_s17, 4  ;;  %s503_s19 = scalar_lea.vmem %s27_s16, 512  ;;  %s37_s18 = int_to_ptr.vmem [resolvable:$true] %s36_s18 }
   0x7   :  { %p504_p0 = scmp.ne.s32.totalorder %s27_s16, %s503_s19  ;;  %p508_p1 = scmp.lt.s32.totalorder %s27_s16, %s27_s16 }
   0x8   :  { %p509_p2 = scmp.lt.s32.totalorder %s503_s19, %s503_s19 }
   0xa   :  { %p510_p3 = por %p509_p2, %p508_p1 }
   0xc   :  { %p511_p4 = pnand %p510_p3, %p504_p0 }
   0xe   :  { %514 = shalt.err (!%p511_p4)
}
   0xf   :  { %29 = dma.hbm_to_vmem [thread:$0]  %s707_s1, 512, %s27_s16, [#allocation3]  }
  0x10   :  { %s523_s22 = scalar_lea.vmem %s37_s18, 512  ;;  %p528_p6 = scmp.lt.s32.totalorder %s37_s18, %s37_s18 }
  0x11   :  { %p524_p5 = scmp.ne.s32.totalorder %s37_s18, %s523_s22  ;;  %p529_p7 = scmp.lt.s32.totalorder %s523_s22, %s523_s22 }
  0x13   :  { %p530_p8 = por %p529_p7, %p528_p6 }
  0x15   :  { %p531_p9 = pnand %p530_p8, %p524_p5 }
  0x17   :  { %534 = shalt.err (!%p531_p9)
}
  0x18   :  { %39 = dma.hbm_to_vmem [thread:$0]  %s708_s2, 512, %s37_s18, [#allocation8]  }
  0x19   :  { %555 = dma.done.wait [#allocation5], 16  }
  0x1a   :  { %556 = vsyncadd [#allocation5], 4294967280 }
  0x1b   :  { %557 = dma.done.wait [#allocation3], 512  }
  0x1c   :  { %558 = vsyncadd [#allocation3], 4294966784 }
  0x1d   :  { %559 = dma.done.wait [#allocation8], 512  }
  0x1e   :  { %560 = vsyncadd [#allocation8], 4294966784 }
  0x1f   :  { %49 = sfence }
  0x20   :  { %s58_s1 = sld [smem:[#allocation2]]  ;;  %v596_v0 = vld [vmem:[#allocation6] sm:$0xff]  ;;  %v598_v1 = vld [vmem:[#allocation6 + $0x8] sm:$0xff]  ;;  %v600_v2 = vld [vmem:[#allocation6 + $0x10] sm:$0xff] }
  0x21   :  { %s409_s24 = sld [smem:[#allocation2 + $0x1]]  ;;  %v602_v3 = vld [vmem:[#allocation6 + $0x18] sm:$0xff]  ;;  %v604_v4 = vld [vmem:[#allocation7] sm:$0xff]  ;;  %v606_v5 = vld [vmem:[#allocation7 + $0x8] sm:$0xff] }
  0x22   :  { %s410_s25 = sld [smem:[#allocation2 + $0x8]]  ;;  %v608_v6 = vld [vmem:[#allocation7 + $0x10] sm:$0xff]  ;;  %v610_v7 = vld [vmem:[#allocation7 + $0x18] sm:$0xff] }
  0x23   :  { %s411_s26 = sld [smem:[#allocation2 + $0xc]] }
  0x24   :  { %s413_s2 = sld [smem:[#allocation2 + $0x2]] }
  0x25   :  { %s414_s27 = sld [smem:[#allocation2 + $0x3]] }
  0x26   :  { %v59_v8 = vstv %s58_s1  ;;  %s412_s28 = sld [smem:[#allocation2 + $0x10]] }
  0x27   :  { %v60_v9 = vmul.f32 %v59_v8, %v596_v0  ;;  %v61_v10 = vmul.f32 %v59_v8, %v598_v1  ;;  %v62_v11 = vmul.f32 %v59_v8, %v600_v2  ;;  %v63_v12 = vmul.f32 %v59_v8, %v602_v3  ;;  %s620_s29 = sld [smem:[#allocation2 + $0x9]] }
  0x28   :  { %v65_v13 = vstv %s409_s24  ;;  %v75_v18 = vstv %s410_s25  ;;  %s622_s30 = sld [smem:[#allocation2 + $0x4]] }
  0x29   :  { %v66_v14 = vmul.f32 %v65_v13, %v604_v4  ;;  %v67_v15 = vmul.f32 %v65_v13, %v606_v5  ;;  %v68_v16 = vmul.f32 %v65_v13, %v608_v6  ;;  %v69_v17 = vmul.f32 %v65_v13, %v610_v7  ;;  %s624_s4 = sld [smem:[#allocation2 + $0xd]] }
  0x2a   :  { %v85_v23 = vstv %s411_s26  ;;  %v105_v24 = vstv %s413_s2  ;;  %s630_s5 = sld [smem:[#allocation2 + $0x11]]  ;;  %s566_s2 = smov [#allocation9]  }
  0x2b   :  { %v70_v19 = vadd.f32 %v66_v14, %v60_v9  ;;  %v71_v20 = vadd.f32 %v67_v15, %v61_v10  ;;  %v72_v21 = vadd.f32 %v68_v16, %v62_v11  ;;  %v73_v22 = vadd.f32 %v69_v17, %v63_v12  ;;  %s636_s6 = sld [smem:[#allocation2 + $0x5]] }
  0x2c   :  { %v111_v25 = vstv %s414_s27  ;;  %v106_v30 = vmul.f32 %v105_v24, %v596_v0  ;;  %v107_v31 = vmul.f32 %v105_v24, %v598_v1  ;;  %v108_v32 = vmul.f32 %v105_v24, %v600_v2  ;;  %s638_s7 = sld [smem:[#allocation2 + $0xa]]  ;;  %s398_s27 = sshll.u32 %s566_s2, 4  ;;  %s399_s27 = int_to_ptr.vmem [resolvable:$true] %s398_s27 }
  0x2d   :  { %v76_v26 = vadd.f32 %v75_v18, %v70_v19  ;;  %v77_v27 = vadd.f32 %v75_v18, %v71_v20  ;;  %v78_v28 = vadd.f32 %v75_v18, %v72_v21  ;;  %v79_v29 = vadd.f32 %v75_v18, %v73_v22  ;;  %s640_s8 = sld [smem:[#allocation2 + $0xe]]  ;;  %p540_p11 = scmp.lt.s32.totalorder %s399_s27, %s399_s27 }
  0x2e   :  { %v109_v33 = vmul.f32 %v105_v24, %v602_v3  ;;  %v112_v38 = vmul.f32 %v111_v25, %v604_v4  ;;  %v113_v39 = vmul.f32 %v111_v25, %v606_v5  ;;  %v114_v40 = vmul.f32 %v111_v25, %v608_v6  ;;  %s642_s9 = sld [smem:[#allocation2 + $0x12]] }
  0x2f   :  { %v80_v34 = vmax.f32 %v76_v26, 0.0  ;;  %v81_v35 = vmax.f32 %v77_v27, 0.0  ;;  %v82_v36 = vmax.f32 %v78_v28, 0.0  ;;  %v83_v37 = vmax.f32 %v79_v29, 0.0  ;;  %s646_s10 = sld [smem:[#allocation2 + $0x6]] }
  0x30   :  { %v115_v41 = vmul.f32 %v111_v25, %v610_v7  ;;  %v95_v42 = vstv %s412_s28  ;;  %v116_v46 = vadd.f32 %v112_v38, %v106_v30  ;;  %v117_v47 = vadd.f32 %v113_v39, %v107_v31  ;;  %s652_s11 = sld [smem:[#allocation2 + $0x7]]  ;;  %s535_s28 = scalar_lea.vmem %s399_s27, 512 }
  0x31   :  { %v86_v43 = vmul.f32 %v85_v23, %v80_v34  ;;  %v87_v44 = vmul.f32 %v85_v23, %v81_v35  ;;  %v88_v45 = vmul.f32 %v85_v23, %v82_v36  ;;  %v118_v48 = vadd.f32 %v114_v40, %v108_v32  ;;  %s670_s12 = sld [smem:[#allocation2 + $0xb]]  ;;  %p536_p10 = scmp.ne.s32.totalorder %s399_s27, %s535_s28 }
  0x32   :  { %v119_v49 = vadd.f32 %v115_v41, %v109_v33  ;;  %v89_v50 = vmul.f32 %v85_v23, %v83_v37  ;;  %v96_v51 = vmul.f32 %v95_v42, %v80_v34  ;;  %v121_v52 = vstv %s620_s29  ;;  %s672_s13 = sld [smem:[#allocation2 + $0xf]]  ;;  %p541_p12 = scmp.lt.s32.totalorder %s535_s28, %s535_s28 }
  0x33   :  { %v151_v53 = vstv %s622_s30  ;;  %v122_v54 = vadd.f32 %v121_v52, %v116_v46  ;;  %v123_v55 = vadd.f32 %v121_v52, %v117_v47  ;;  %v124_v56 = vadd.f32 %v121_v52, %v118_v48  ;;  %s682_s14 = sld [smem:[#allocation2 + $0x13]] }
  0x34   :  { %v125_v57 = vadd.f32 %v121_v52, %v119_v49  ;;  %v97_v58 = vmul.f32 %v95_v42, %v81_v35  ;;  %v648_v59 = vmul.f32 %v95_v42, %v82_v36  ;;  %v131_v60 = vstv %s624_s4  ;;  %s684_s15 = sld [smem:[#allocation2 + $0x14]]  ;;  %p542_p13 = por %p541_p12, %p540_p11 }
  0x35   :  { %v141_v61 = vstv %s630_s5  ;;  %v126_v62 = vmax.f32 %v122_v54, 0.0  ;;  %v127_v63 = vmax.f32 %v123_v55, 0.0  ;;  %v128_v8 = vmax.f32 %v124_v56, 0.0  ;;  %s686_s16 = sld [smem:[#allocation2 + $0x15]] }
  0x36   :  { %v129_v9 = vmax.f32 %v125_v57, 0.0  ;;  %v654_v10 = vmul.f32 %v95_v42, %v83_v37  ;;  %v152_v11 = vmul.f32 %v151_v53, %v596_v0  ;;  %v153_v12 = vmul.f32 %v151_v53, %v598_v1  ;;  %s438_s17 = sld [smem:[#allocation2 + $0x16]]  ;;  %p543_p0 = pnand %p542_p13, %p536_p10 }
  0x37   :  { %v154_v13 = vmul.f32 %v151_v53, %v600_v2  ;;  %v132_v14 = vmul.f32 %v131_v60, %v126_v62  ;;  %v133_v15 = vmul.f32 %v131_v60, %v127_v63  ;;  %v134_v16 = vmul.f32 %v131_v60, %v128_v8  ;;  %s439_s18 = sld [smem:[#allocation2 + $0x17]] }
  0x38   :  { %v155_v17 = vmul.f32 %v151_v53, %v602_v3  ;;  %v135_v18 = vmul.f32 %v131_v60, %v129_v9  ;;  %v142_v19 = vmul.f32 %v141_v61, %v126_v62  ;;  %v157_v20 = vstv %s636_s6  ;;  %s440_s19 = sld [smem:[#allocation2 + $0x18]] }
  0x39   :  { %v167_v21 = vstv %s638_s7  ;;  %v143_v22 = vmul.f32 %v141_v61, %v127_v63  ;;  %v144_v23 = vmul.f32 %v141_v61, %v128_v8  ;;  %v177_v24 = vstv %s640_s8  ;;  %s441_s1 = sld [smem:[#allocation2 + $0x19]] }
  0x3a   :  { %v187_v25 = vstv %s642_s9  ;;  %v136_v26 = vadd.f32 %v132_v14, %v86_v43  ;;  %v137_v27 = vadd.f32 %v133_v15, %v87_v44  ;;  %v138_v28 = vadd.f32 %v134_v16, %v88_v45  ;;  %s442_s24 = sld [smem:[#allocation2 + $0x1a]] }
  0x3b   :  { %v145_v29 = vmul.f32 %v141_v61, %v129_v9  ;;  %v158_v30 = vmul.f32 %v157_v20, %v604_v4  ;;  %v159_v31 = vmul.f32 %v157_v20, %v606_v5  ;;  %v160_v32 = vmul.f32 %v157_v20, %v608_v6 }
  0x3c   :  { %v161_v33 = vmul.f32 %v157_v20, %v610_v7  ;;  %v139_v34 = vadd.f32 %v135_v18, %v89_v50  ;;  %v146_v35 = vadd.f32 %v142_v19, %v96_v51  ;;  %v197_v36 = vstv %s646_s10 }
  0x3d   :  { %v203_v37 = vstv %s652_s11  ;;  %v162_v38 = vadd.f32 %v158_v30, %v152_v11  ;;  %v163_v39 = vadd.f32 %v159_v31, %v153_v12  ;;  %v164_v40 = vadd.f32 %v160_v32, %v154_v13 }
  0x3e   :  { %v165_v41 = vadd.f32 %v161_v33, %v155_v17  ;;  %v198_v42 = vmul.f32 %v197_v36, %v596_v0  ;;  %v199_v43 = vmul.f32 %v197_v36, %v598_v1  ;;  %v200_v44 = vmul.f32 %v197_v36, %v600_v2 }
  0x3f   :  { %v201_v45 = vmul.f32 %v197_v36, %v602_v3  ;;  %v168_v46 = vadd.f32 %v167_v21, %v162_v38  ;;  %v169_v47 = vadd.f32 %v167_v21, %v163_v39  ;;  %v170_v48 = vadd.f32 %v167_v21, %v164_v40 }
  0x40   :  { %v171_v49 = vadd.f32 %v167_v21, %v165_v41  ;;  %v204_v50 = vmul.f32 %v203_v37, %v604_v4  ;;  %v205_v51 = vmul.f32 %v203_v37, %v606_v5  ;;  %v206_v52 = vmul.f32 %v203_v37, %v608_v6 }
  0x41   :  { %v207_v53 = vmul.f32 %v203_v37, %v610_v7  ;;  %v172_v54 = vmax.f32 %v168_v46, 0.0  ;;  %v173_v55 = vmax.f32 %v169_v47, 0.0  ;;  %v174_v56 = vmax.f32 %v170_v48, 0.0 }
  0x42   :  { %v175_v57 = vmax.f32 %v171_v49, 0.0  ;;  %v147_v60 = vadd.f32 %v143_v22, %v97_v58  ;;  %v208_v61 = vadd.f32 %v204_v50, %v198_v42  ;;  %v209_v62 = vadd.f32 %v205_v51, %v199_v43 }
  0x43   :  { %v210_v63 = vadd.f32 %v206_v52, %v200_v44  ;;  %v178_v8 = vmul.f32 %v177_v24, %v172_v54  ;;  %v179_v9 = vmul.f32 %v177_v24, %v173_v55  ;;  %v180_v11 = vmul.f32 %v177_v24, %v174_v56 }
  0x44   :  { %v211_v12 = vadd.f32 %v207_v53, %v201_v45  ;;  %v181_v13 = vmul.f32 %v177_v24, %v175_v57  ;;  %v188_v14 = vmul.f32 %v187_v25, %v172_v54  ;;  %v189_v15 = vmul.f32 %v187_v25, %v173_v55 }
  0x45   :  { %v213_v16 = vstv %s670_s12  ;;  %v148_v17 = vadd.f32 %v144_v23, %v648_v59  ;;  %v149_v18 = vadd.f32 %v145_v29, %v654_v10  ;;  %v190_v58 = vmul.f32 %v187_v25, %v174_v56 }
  0x46   :  { %v223_v19 = vstv %s672_s13  ;;  %v182_v20 = vadd.f32 %v178_v8, %v136_v26  ;;  %v183_v21 = vadd.f32 %v179_v9, %v137_v27  ;;  %v184_v22 = vadd.f32 %v180_v11, %v138_v28 }
  0x47   :  { %v191_v30 = vmul.f32 %v187_v25, %v175_v57  ;;  %v214_v31 = vadd.f32 %v213_v16, %v208_v61  ;;  %v215_v32 = vadd.f32 %v213_v16, %v209_v62  ;;  %v216_v33 = vadd.f32 %v213_v16, %v210_v63 }
  0x48   :  { %v217_v24 = vadd.f32 %v213_v16, %v211_v12  ;;  %v185_v36 = vadd.f32 %v181_v13, %v139_v34  ;;  %v192_v37 = vadd.f32 %v188_v14, %v146_v35  ;;  %v193_v38 = vadd.f32 %v189_v15, %v147_v60 }
  0x49   :  { %v233_v39 = vstv %s682_s14  ;;  %v218_v40 = vmax.f32 %v214_v31, 0.0  ;;  %v219_v59 = vmax.f32 %v215_v32, 0.0  ;;  %v220_v23 = vmax.f32 %v216_v33, 0.0 }
  0x4a   :  { %v221_v10 = vmax.f32 %v217_v24, 0.0  ;;  %v194_v29 = vadd.f32 %v190_v58, %v148_v17  ;;  %v195_v41 = vadd.f32 %v191_v30, %v149_v18  ;;  %v243_v26 = vstv %s684_s15 }
  0x4b   :  { %v273_v27 = vstv %s686_s16  ;;  %v224_v28 = vmul.f32 %v223_v19, %v218_v40  ;;  %v225_v42 = vmul.f32 %v223_v19, %v219_v59  ;;  %v226_v25 = vmul.f32 %v223_v19, %v220_v23 }
  0x4c   :  { %v227_v43 = vmul.f32 %v223_v19, %v221_v10  ;;  %v234_v44 = vmul.f32 %v233_v39, %v218_v40  ;;  %v235_v45 = vmul.f32 %v233_v39, %v219_v59  ;;  %v236_v46 = vmul.f32 %v233_v39, %v220_v23 }
  0x4d   :  { %v237_v47 = vmul.f32 %v233_v39, %v221_v10  ;;  %v228_v34 = vadd.f32 %v224_v28, %v182_v20  ;;  %v229_v35 = vadd.f32 %v225_v42, %v183_v21  ;;  %v230_v48 = vadd.f32 %v226_v25, %v184_v22 }
  0x4e   :  { %v231_v49 = vadd.f32 %v227_v43, %v185_v36  ;;  %v238_v50 = vadd.f32 %v234_v44, %v192_v37  ;;  %v239_v51 = vadd.f32 %v235_v45, %v193_v38  ;;  %v240_v52 = vadd.f32 %v236_v46, %v194_v29 }
  0x4f   :  { %v241_v53 = vadd.f32 %v237_v47, %v195_v41  ;;  %v244_v54 = vadd.f32 %v243_v26, %v228_v34  ;;  %v245_v55 = vadd.f32 %v243_v26, %v229_v35  ;;  %v246_v56 = vadd.f32 %v243_v26, %v230_v48 }
  0x50   :  { %v247_v57 = vadd.f32 %v243_v26, %v231_v49  ;;  %v274_v60 = vadd.f32 %v273_v27, %v238_v50  ;;  %v275_v61 = vadd.f32 %v273_v27, %v239_v51  ;;  %v276_v9 = vadd.f32 %v273_v27, %v240_v52 }
  0x51   :  { %v429_v62 = vmul.f32 -1.442695, %v244_v54  ;;  %v430_v63 = vmul.f32 -1.442695, %v245_v55  ;;  %v431_v8 = vmul.f32 -1.442695, %v246_v56  ;;  %v277_v12 = vadd.f32 %v273_v27, %v241_v53 }
  0x52   :  { %v432_v11 = vmul.f32 -1.442695, %v247_v57  ;;  %v434_v13 = vmul.f32 -1.442695, %v274_v60  ;;  %v435_v14 = vmul.f32 -1.442695, %v275_v61  ;;  %v307_v41 = vstv %s438_s17 }
  0x53   :  { %453 = vpow2.f32 %v429_v62  ;;  %v436_v15 = vmul.f32 -1.442695, %v276_v9  ;;  %v437_v16 = vmul.f32 -1.442695, %v277_v12  ;;  %v317_v25 = vstv %s439_s18 }
  0x54   :  { %455 = vpow2.f32 %v430_v63  ;;  %v327_v51 = vstv %s440_s19 }
  0x55   :  { %457 = vpow2.f32 %v431_v8 }
  0x56   :  { %459 = vpow2.f32 %v432_v11 }
  0x57   :  { %461 = vpow2.f32 %v434_v13 }
  0x58   :  { %463 = vpow2.f32 %v435_v14 }
  0x59   :  { %465 = vpow2.f32 %v436_v15 }
  0x5a   :  { %467 = vpow2.f32 %v437_v16 }
  0x60   :  { %v454_v17 = vpop.eup %453 }
  0x61   :  { %v456_v18 = vpop.eup %455  ;;  %v260_v58 = vadd.f32 1.0, %v454_v17 }
  0x62   :  { %v458_v19 = vpop.eup %457  ;;  %v261_v20 = vadd.f32 1.0, %v456_v18 }
  0x63   :  { %v460_v21 = vpop.eup %459  ;;  %v262_v22 = vadd.f32 1.0, %v458_v19  ;;  %469 = vrcp.f32 %v260_v58 }
  0x64   :  { %v462_v30 = vpop.eup %461  ;;  %v263_v31 = vadd.f32 1.0, %v460_v21  ;;  %471 = vrcp.f32 %v261_v20 }
  0x65   :  { %v464_v32 = vpop.eup %463  ;;  %473 = vrcp.f32 %v262_v22  ;;  %v290_v33 = vadd.f32 1.0, %v462_v30 }
  0x66   :  { %v466_v24 = vpop.eup %465  ;;  %475 = vrcp.f32 %v263_v31  ;;  %v291_v36 = vadd.f32 1.0, %v464_v32 }
  0x67   :  { %v468_v37 = vpop.eup %467  ;;  %v292_v38 = vadd.f32 1.0, %v466_v24  ;;  %477 = vrcp.f32 %v290_v33 }
  0x68   :  { %v293_v39 = vadd.f32 1.0, %v468_v37  ;;  %479 = vrcp.f32 %v291_v36 }
  0x69   :  { %481 = vrcp.f32 %v292_v38 }
  0x6a   :  { %483 = vrcp.f32 %v293_v39 }
  0x70   :  { %v470_v40 = vpop.eup %469 }
  0x71   :  { %v472_v59 = vpop.eup %471  ;;  %v303_v23 = vmul.f32 %v470_v40, %v596_v0 }
  0x72   :  { %v474_v10 = vpop.eup %473  ;;  %v304_v29 = vmul.f32 %v472_v59, %v598_v1 }
  0x73   :  { %v476_v26 = vpop.eup %475  ;;  %v305_v27 = vmul.f32 %v474_v10, %v600_v2  ;;  %v308_v44 = vmul.f32 %v307_v41, %v303_v23  ;;  %v383_v10 = vstv %s442_s24 }
  0x74   :  { %v478_v28 = vpop.eup %477  ;;  %v306_v42 = vmul.f32 %v476_v26, %v602_v3  ;;  %v309_v47 = vmul.f32 %v307_v41, %v304_v29 }
  0x75   :  { %v480_v43 = vpop.eup %479  ;;  %v313_v45 = vmul.f32 %v478_v28, %v604_v4  ;;  %v310_v35 = vmul.f32 %v307_v41, %v305_v27 }
  0x76   :  { %v482_v46 = vpop.eup %481  ;;  %v314_v34 = vmul.f32 %v480_v43, %v606_v5  ;;  %v311_v49 = vmul.f32 %v307_v41, %v306_v42 }
  0x77   :  { %v484_v0 = vpop.eup %483  ;;  %v315_v1 = vmul.f32 %v482_v46, %v608_v6  ;;  %v318_v48 = vmul.f32 %v317_v25, %v313_v45 }
  0x78   :  { %v316_v2 = vmul.f32 %v484_v0, %v610_v7  ;;  %v319_v50 = vmul.f32 %v317_v25, %v314_v34 }
  0x79   :  { %v320_v3 = vmul.f32 %v317_v25, %v315_v1  ;;  %v322_v52 = vadd.f32 %v318_v48, %v308_v44 }
  0x7a   :  { %v321_v53 = vmul.f32 %v317_v25, %v316_v2  ;;  %v323_v54 = vadd.f32 %v319_v50, %v309_v47 }
  0x7b   :  { %v324_v55 = vadd.f32 %v320_v3, %v310_v35  ;;  %v328_v4 = vadd.f32 %v327_v51, %v322_v52 }
  0x7c   :  { %v325_v56 = vadd.f32 %v321_v53, %v311_v49  ;;  %v329_v57 = vadd.f32 %v327_v51, %v323_v54 }
  0x7d   :  { %v330_v60 = vadd.f32 %v327_v51, %v324_v55 }
  0x7e   :  { %v331_v5 = vadd.f32 %v327_v51, %v325_v56  ;;  %v332_v61 = vadd.f32 %v329_v57, %v328_v4 }
  0x80   :  { %v333_v62 = vadd.f32 %v332_v61, %v330_v60 }
  0x82   :  { %v334_v63 = vadd.f32 %v333_v62, %v331_v5 }
  0x84   :  { %335 = vadd.xlane.f32.xlu0 %v334_v63 }
 0x10d   :  { %v336_v6 = vpop.xlane.xlu0 %335 }
 0x10e   :  { %v337_v8 = vrot.slane %v336_v6, 4 }
 0x110   :  { %v338_v9 = vadd.f32 %v337_v8, %v336_v6 }
 0x112   :  { %v339_v7 = vrot.slane %v338_v9, 2 }
 0x114   :  { %v340_v11 = vadd.f32 %v339_v7, %v338_v9 }
 0x116   :  { %v341_v12 = vrot.slane %v340_v11, 1 }
 0x118   :  { %v342_v13 = vadd.f32 %v341_v12, %v340_v11 }
 0x11a   :  { %443 = vpush %v342_v13 }
 0x14b   :  { %s444_s20 = spop %443 }
 0x14c   :  { %s346_s21 = smul.f32 0.00024414063, %s444_s20 }
 0x14e   :  { %v347_v14 = vstv %s346_s21 }
 0x14f   :  { %v348_v15 = vsub.f32 %v328_v4, %v347_v14  ;;  %v349_v16 = vsub.f32 %v329_v57, %v347_v14  ;;  %v350_v17 = vsub.f32 %v330_v60, %v347_v14  ;;  %v351_v18 = vsub.f32 %v331_v5, %v347_v14 }
 0x151   :  { %v352_v58 = vmul.f32 %v348_v15, %v348_v15  ;;  %v353_v19 = vmul.f32 %v349_v16, %v349_v16  ;;  %v354_v20 = vmul.f32 %v350_v17, %v350_v17  ;;  %v355_v22 = vmul.f32 %v351_v18, %v351_v18 }
 0x153   :  { %v356_v21 = vadd.f32 %v353_v19, %v352_v58 }
 0x155   :  { %v357_v30 = vadd.f32 %v356_v21, %v354_v20 }
 0x157   :  { %v358_v31 = vadd.f32 %v357_v30, %v355_v22 }
 0x159   :  { %359 = vadd.xlane.f32.xlu0 %v358_v31 }
 0x1e2   :  { %v360_v32 = vpop.xlane.xlu0 %359 }
 0x1e3   :  { %v361_v33 = vrot.slane %v360_v32, 4 }
 0x1e5   :  { %v362_v24 = vadd.f32 %v361_v33, %v360_v32 }
 0x1e7   :  { %v363_v36 = vrot.slane %v362_v24, 2 }
 0x1e9   :  { %v364_v37 = vadd.f32 %v363_v36, %v362_v24 }
 0x1eb   :  { %v365_v38 = vrot.slane %v364_v37, 1 }
 0x1ed   :  { %v366_v39 = vadd.f32 %v365_v38, %v364_v37 }
 0x1ef   :  { %445 = vpush %v366_v39 }
 0x220   :  { %s446_s22 = spop %445 }
 0x221   :  { %s370_s0 = smul.f32 0.00024414063, %s446_s22 }
 0x223   :  { %s371_s23 = sadd.f32 1e-05, %s370_s0 }
 0x225   :  { %v372_v40 = vstv %s371_s23 }
 0x226   :  { %485 = vrsqrt.f32 %v372_v40 }
 0x233   :  { %v486_v59 = vpop.eup %485 }
 0x234   :  { %447 = vpush %v486_v59 }
 0x265   :  { %s448_s25 = spop %447 }
 0x266   :  { %s377_s26 = smul.f32 %s448_s25, %s441_s1 }
 0x268   :  { %v378_v23 = vstv %s377_s26 }
 0x269   :  { %v379_v29 = vmul.f32 %v378_v23, %v348_v15  ;;  %v380_v41 = vmul.f32 %v378_v23, %v349_v16  ;;  %v381_v26 = vmul.f32 %v378_v23, %v350_v17  ;;  %v382_v27 = vmul.f32 %v378_v23, %v351_v18 }
 0x26b   :  { %v384_v28 = vadd.f32 %v383_v10, %v379_v29  ;;  %v385_v42 = vadd.f32 %v383_v10, %v380_v41  ;;  %v386_v25 = vadd.f32 %v383_v10, %v381_v26  ;;  %v387_v43 = vadd.f32 %v383_v10, %v382_v27 }
 0x26d   :  { %388 = vst [vmem:[#allocation9] sm:$0xff] %v384_v28  ;;  %389 = vst [vmem:[#allocation9 + $0x8] sm:$0xff] %v385_v42 }
 0x26e   :  { %390 = vst [vmem:[#allocation9 + $0x10] sm:$0xff] %v386_v25  ;;  %391 = vst [vmem:[#allocation9 + $0x18] sm:$0xff] %v387_v43 }
 0x26f   :  { %546 = shalt.err (!%p543_p0)
}
 0x270   :  { %401 = dma.vmem_to_hbm [thread:$0]  %s399_s27, 512, %s709_s3, [#allocation4]  }
 0x271   :  { %561 = dma.done.wait [#allocation4], 512  }
 0x272   :  { %562 = vsyncadd [#allocation4], 4294966784 }
 0x273   :  { %405 = vsyncpa [#allocation3], 1 }
 0x274   :  { %406 = vsyncpa [#allocation8], 1 }
 0x275   :  { %407 = vsyncpa [#allocation4], 1 }
 0x276   :  { %408 = vsyncpa [#allocation5], 1 }

</bundles_post_ra>
